<compile_context>
chip_gen: v5e
topology: v5e:2x2
jax: 0.10.0
libtpu: 0.0.40
codegen_flags: <defaults>
</compile_context>

<pallas_src>
import jax
import jax.numpy as jnp
from jax.experimental import pallas as pl
from jax.experimental.pallas import tpu as pltpu

_LANE = 128
_VMEM_BUDGET_BYTES = 24 << 20  # conservative working-set budget (v7x has 64 MiB/TC)


def _round_up(v, m):
    return ((v + m - 1) // m) * m


def _sublane(dtype):
    # sublane packing: 8 rows per vreg for 4-byte dtypes, 16 for 2-byte, 32 for 1-byte
    return max(8, 32 // jnp.dtype(dtype).itemsize)


def glu_kernel(x_ref, c_ref, wx_ref, wc_ref, b_ref, o_ref):
    """One batch tile.

    x_ref : [TM, Din]        batch tile of x
    c_ref : [TM, Dcond]      batch tile of condition
    wx_ref: [Din, 2*Npad]    x-rows of fused (fc | gate) weights, cols padded to 128
    wc_ref: [Dcond, 2*Npad]  condition-rows of fused weights
    b_ref : [1, 2*Npad]      fused (fc | gate) biases
    o_ref : [TM, Npad]       lane-dense output tile (Din padded up to a multiple of 128)
    """
    npad = o_ref.shape[-1]
    # Fused projection: one MXU pass per input source, f32 accumulation.
    acc = jnp.dot(x_ref[...], wx_ref[...], preferred_element_type=jnp.float32)
    acc = acc + jnp.dot(c_ref[...], wc_ref[...], preferred_element_type=jnp.float32)
    acc = acc + b_ref[...]
    fc = acc[:, :npad]       # 128-aligned static split -> no cross-lane copy
    gate = acc[:, npad:]
    o_ref[...] = (fc * jax.nn.sigmoid(gate)).astype(o_ref.dtype)


def glu_forward(x, condition, w_fc, b_fc, w_gate, b_gate, *, tile_m=512):
    """x: [..., Din], condition: [..., Dcond] -> [..., Din].

    Weights are stored as [in_features, out_features] (= PyTorch W.T), rows ordered
    x-first then condition, matching torch.cat([x, condition], dim=-1).
    """
    assert x.shape[:-1] == condition.shape[:-1]
    Din = x.shape[-1]
    Dcond = condition.shape[-1]
    K = Din + Dcond
    assert w_fc.shape == (K, Din) and w_gate.shape == (K, Din)

    lead_shape = x.shape[:-1]
    x2 = x.reshape(-1, Din)
    c2 = condition.reshape(-1, Dcond)
    B = x2.shape[0]

    Npad = _round_up(Din, _LANE)

    # --- trace-time weight plumbing (static slices / pads, zero runtime cost) ---
    def pad_cols(w):
        return jnp.pad(w, ((0, 0), (0, Npad - Din)))

    # fused (fc | gate) weights, split by input source so no activation concat
    wx = jnp.concatenate([pad_cols(w_fc[:Din]), pad_cols(w_gate[:Din])], axis=-1)    # [Din,   2*Npad]
    wc = jnp.concatenate([pad_cols(w_fc[Din:]), pad_cols(w_gate[Din:])], axis=-1)    # [Dcond, 2*Npad]
    b = jnp.concatenate(
        [jnp.pad(b_fc, (0, Npad - Din)), jnp.pad(b_gate, (0, Npad - Din))]
    ).reshape(1, 2 * Npad)

    # --- batch tiling: TM multiple of the sublane pack, capped by a VMEM budget ---
    sub = _sublane(x.dtype)
    itemsize = jnp.dtype(x.dtype).itemsize
    weight_bytes = (wx.size + wc.size + b.size) * itemsize
    # per-tile bytes: double-buffered x/cond tiles + double-buffered output tile + f32 acc
    per_row = 2 * (Din + Dcond) * itemsize + 2 * Npad * itemsize + 2 * Npad * 4
    tm_cap = max(sub, (_VMEM_BUDGET_BYTES - weight_bytes) // max(per_row, 1))

    TM = max(sub, min(tile_m, tm_cap, _round_up(B, sub)))
    TM = _round_up(TM, sub)
    B_pad = _round_up(B, TM)
    if B_pad != B:
        x2 = jnp.pad(x2, ((0, B_pad - B), (0, 0)))
        c2 = jnp.pad(c2, ((0, B_pad - B), (0, 0)))

    grid = (B_pad // TM,)

    out = pl.pallas_call(
        glu_kernel,
        out_shape=jax.ShapeDtypeStruct((B_pad, Npad), x.dtype),
        grid_spec=pltpu.PrefetchScalarGridSpec(
            num_scalar_prefetch=0,
            grid=grid,
            in_specs=[
                pl.BlockSpec((TM, Din), lambda i: (i, 0)),          # x batch tile
                pl.BlockSpec((TM, Dcond), lambda i: (i, 0)),        # condition batch tile
                pl.BlockSpec((Din, 2 * Npad), lambda i: (0, 0)),    # weights stay VMEM-resident
                pl.BlockSpec((Dcond, 2 * Npad), lambda i: (0, 0)),
                pl.BlockSpec((1, 2 * Npad), lambda i: (0, 0)),      # fused biases
            ],
            out_specs=pl.BlockSpec((TM, Npad), lambda i: (i, 0)),   # lane-dense output tile
        ),
        compiler_params=pltpu.CompilerParams(
            dimension_semantics=("parallel",),   # shard batch grid across TCs on v7x
        ),
    )(x2, c2, wx, wc, b)

    return out[:B, :Din].reshape(*lead_shape, Din)


def init_params(key, input_dim, condition_dim, dtype=jnp.float32):
    """Deterministic init matching nn.Linear default: U(-1/sqrt(fan_in), 1/sqrt(fan_in))."""
    fan_in = input_dim + condition_dim
    bound = 1.0 / jnp.sqrt(fan_in)
    k1, k2, k3, k4 = jax.random.split(key, 4)
    w_fc = jax.random.uniform(k1, (fan_in, input_dim), dtype, -bound, bound)
    b_fc = jax.random.uniform(k2, (input_dim,), dtype, -bound, bound)
    w_gate = jax.random.uniform(k3, (fan_in, input_dim), dtype, -bound, bound)
    b_gate = jax.random.uniform(k4, (input_dim,), dtype, -bound, bound)
    return w_fc, b_fc, w_gate, b_gate


def _reference(x, condition, w_fc, b_fc, w_gate, b_gate):
    combined = jnp.concatenate([x, condition], axis=-1)
    return (combined @ w_fc + b_fc) * jax.nn.sigmoid(combined @ w_gate + b_gate)


if __name__ == "__main__":
    key = jax.random.PRNGKey(0)
    k_x, k_c, k_p = jax.random.split(key, 3)

    batch, input_dim, condition_dim = 8, 32, 16
    x = jax.random.normal(k_x, (batch, input_dim), jnp.float32)
    condition = jax.random.normal(k_c, (batch, condition_dim), jnp.float32)
    w_fc, b_fc, w_gate, b_gate = init_params(k_p, input_dim, condition_dim)

    out = glu_forward(x, condition, w_fc, b_fc, w_gate, b_gate)
    jax.block_until_ready(out)
    ref = _reference(x, condition, w_fc, b_fc, w_gate, b_gate)
    assert out.shape == (batch, input_dim)
    assert jnp.allclose(out, ref, atol=1e-5, rtol=1e-5)

    # multi-tile + ragged-batch path (grid > 1, B not a multiple of TM)
    b2 = 20
    x2 = jax.random.normal(k_x, (b2, input_dim), jnp.float32)
    c2 = jax.random.normal(k_c, (b2, condition_dim), jnp.float32)
    out2 = glu_forward(x2, c2, w_fc, b_fc, w_gate, b_gate, tile_m=8)
    jax.block_until_ready(out2)
    ref2 = _reference(x2, c2, w_fc, b_fc, w_gate, b_gate)
    assert out2.shape == (b2, input_dim)
    assert jnp.allclose(out2, ref2, atol=1e-5, rtol=1e-5)

    # leading batch dims, as the PyTorch module allows (x.size()[:-1] == condition.size()[:-1])
    x3 = jax.random.normal(k_x, (2, 5, input_dim), jnp.float32)
    c3 = jax.random.normal(k_c, (2, 5, condition_dim), jnp.float32)
    out3 = glu_forward(x3, c3, w_fc, b_fc, w_gate, b_gate)
    jax.block_until_ready(out3)
    ref3 = _reference(x3, c3, w_fc, b_fc, w_gate, b_gate)
    assert out3.shape == (2, 5, input_dim)
    assert jnp.allclose(out3, ref3, atol=1e-5, rtol=1e-5)

    print("KERNEL_OK")
</pallas_src>

<mosaic_0001>
module attributes {stable_mosaic.version = 11 : i64} {
  func.func @glu_kernel(%arg0: i32, %arg1: memref<8x32xf32, #tpu.memory_space<vmem>>, %arg2: memref<8x16xf32, #tpu.memory_space<vmem>>, %arg3: memref<32x256xf32, #tpu.memory_space<vmem>>, %arg4: memref<16x256xf32, #tpu.memory_space<vmem>>, %arg5: memref<1x256xf32, #tpu.memory_space<vmem>>, %arg6: memref<8x128xf32, #tpu.memory_space<vmem>>) attributes {dimension_semantics = [#tpu.dimension_semantics<parallel>], iteration_bounds = array<i64: 1>, scalar_prefetch = 0 : i64, scratch_operands = 0 : i64, tpu.core_type = #tpu.core_type<tc>, window_params = [{transform_indices = @transform_0, window_bounds = array<i64: 8, 32>}, {transform_indices = @transform_1, window_bounds = array<i64: 8, 16>}, {pipeline_mode = #tpu.pipeline_mode<synchronous>, transform_indices = @transform_2, window_bounds = array<i64: 32, 256>}, {pipeline_mode = #tpu.pipeline_mode<synchronous>, transform_indices = @transform_3, window_bounds = array<i64: 16, 256>}, {pipeline_mode = #tpu.pipeline_mode<synchronous>, transform_indices = @transform_4, window_bounds = array<i64: 1, 256>}, {transform_indices = @transform_5, window_bounds = array<i64: 8, 128>}]} {
    %c0 = arith.constant 0 : index
    %c0_0 = arith.constant 0 : index
    %0 = vector.load %arg1[%c0, %c0_0] : memref<8x32xf32, #tpu.memory_space<vmem>>, vector<8x32xf32>
    %c0_1 = arith.constant 0 : index
    %c0_2 = arith.constant 0 : index
    %1 = vector.load %arg3[%c0_1, %c0_2] : memref<32x256xf32, #tpu.memory_space<vmem>>, vector<32x256xf32>
    %cst = arith.constant dense<0.000000e+00> : vector<8x256xf32>
    %2 = tpu.matmul %0, %1, %cst {dimension_numbers = #tpu.dot_dimension_numbers<[1], [0], [0], [1], [0, 0, 1, 1], [], []>} : vector<8x32xf32>, vector<32x256xf32>, vector<8x256xf32> -> vector<8x256xf32>
    %c0_3 = arith.constant 0 : index
    %c0_4 = arith.constant 0 : index
    %3 = vector.load %arg2[%c0_3, %c0_4] : memref<8x16xf32, #tpu.memory_space<vmem>>, vector<8x16xf32>
    %c0_5 = arith.constant 0 : index
    %c0_6 = arith.constant 0 : index
    %4 = vector.load %arg4[%c0_5, %c0_6] : memref<16x256xf32, #tpu.memory_space<vmem>>, vector<16x256xf32>
    %cst_7 = arith.constant dense<0.000000e+00> : vector<8x256xf32>
    %5 = tpu.matmul %3, %4, %cst_7 {dimension_numbers = #tpu.dot_dimension_numbers<[1], [0], [0], [1], [0, 0, 1, 1], [], []>} : vector<8x16xf32>, vector<16x256xf32>, vector<8x256xf32> -> vector<8x256xf32>
    %6 = arith.addf %2, %5 : vector<8x256xf32>
    %c0_8 = arith.constant 0 : index
    %c0_9 = arith.constant 0 : index
    %7 = vector.load %arg5[%c0_8, %c0_9] : memref<1x256xf32, #tpu.memory_space<vmem>>, vector<1x256xf32>
    %8 = vector.broadcast %7 : vector<1x256xf32> to vector<8x256xf32>
    %9 = arith.addf %6, %8 : vector<8x256xf32>
    %10 = vector.extract_strided_slice %9 {offsets = [0, 0], sizes = [8, 128], strides = [1, 1]} : vector<8x256xf32> to vector<8x128xf32>
    %11 = vector.extract_strided_slice %9 {offsets = [0, 128], sizes = [8, 128], strides = [1, 1]} : vector<8x256xf32> to vector<8x128xf32>
    %12 = arith.negf %11 : vector<8x128xf32>
    %13 = math.exp %12 : vector<8x128xf32>
    %cst_10 = arith.constant 1.000000e+00 : f32
    %14 = vector.broadcast %cst_10 : f32 to vector<8x128xf32>
    %15 = arith.addf %14, %13 : vector<8x128xf32>
    %16 = arith.divf %14, %15 : vector<8x128xf32>
    %17 = arith.mulf %10, %16 : vector<8x128xf32>
    %c0_11 = arith.constant 0 : index
    %c0_12 = arith.constant 0 : index
    %18 = vector.load %arg6[%c0_11, %c0_12] : memref<8x128xf32, #tpu.memory_space<vmem>>, vector<8x128xf32>
    tpu.vector_store %arg6[%c0_11, %c0_12], %17 {strides = array<i32>} : memref<8x128xf32, #tpu.memory_space<vmem>>, vector<8x128xf32>,
    return
  }
  func.func @transform_0(%arg0: i32) -> (i32, i32) {
    %c0_i32 = arith.constant 0 : i32
    %c0_i32_0 = arith.constant 0 : i32
    return %arg0, %c0_i32 : i32, i32
  }
  func.func @transform_1(%arg0: i32) -> (i32, i32) {
    %c0_i32 = arith.constant 0 : i32
    %c0_i32_0 = arith.constant 0 : i32
    return %arg0, %c0_i32 : i32, i32
  }
  func.func @transform_2(%arg0: i32) -> (i32, i32) {
    %c0_i32 = arith.constant 0 : i32
    %c0_i32_0 = arith.constant 0 : i32
    %c0_i32_1 = arith.constant 0 : i32
    return %c0_i32, %c0_i32_0 : i32, i32
  }
  func.func @transform_3(%arg0: i32) -> (i32, i32) {
    %c0_i32 = arith.constant 0 : i32
    %c0_i32_0 = arith.constant 0 : i32
    %c0_i32_1 = arith.constant 0 : i32
    return %c0_i32, %c0_i32_0 : i32, i32
  }
  func.func @transform_4(%arg0: i32) -> (i32, i32) {
    %c0_i32 = arith.constant 0 : i32
    %c0_i32_0 = arith.constant 0 : i32
    %c0_i32_1 = arith.constant 0 : i32
    return %c0_i32, %c0_i32_0 : i32, i32
  }
  func.func @transform_5(%arg0: i32) -> (i32, i32) {
    %c0_i32 = arith.constant 0 : i32
    %c0_i32_0 = arith.constant 0 : i32
    return %arg0, %c0_i32 : i32, i32
  }
}

</mosaic_0001>

<bundles_post_ra>
// kernel: tpu_custom_call.1
= control target key start
LH: loop header
LB: loop body
LE: loop exit
PB: predicated region body
PF: predicated region fallthrough
CT: control target
= control target key end

     0   :  { %10 = vsyncpa [#allocation3], 0  ;;  %s431_s0 = inlined_call_operand.hbm [shape: f32[8,32], index: 0, kind: input, shape index: {}]   ;;  %s432_s1 = inlined_call_operand.hbm [shape: f32[8,16], index: 1, kind: input, shape index: {}]   ;;  %s433_s2 = inlined_call_operand.hbm [shape: f32[32,256], index: 2, kind: input, shape index: {}]   ;;  %s434_s3 = inlined_call_operand.hbm [shape: f32[16,256], index: 3, kind: input, shape index: {}]   ;;  %s435_s4 = inlined_call_operand.vmem [shape: f32[1,256], index: 4, kind: input, shape index: {}]   ;;  %s436_s5 = inlined_call_operand.hbm [shape: f32[8,128], index: 5, kind: output, shape index: {}]  }
   0x1   :  { %11 = vsyncpa [#allocation6], 0 }
   0x2   :  { %12 = vsyncpa [#allocation9], 0  ;;  %s30_s20 = sshll.u32 %s432_s1, 4  ;;  %s31_s20 = int_to_ptr.hbm [resolvable:$true] %s30_s20 }
   0x3   :  { %13 = vsyncpa [#allocation4], 0  ;;  %s374_s21 = smov [#allocation5]   ;;  %s19_s25 = sshll.u32 %s431_s0, 4  ;;  %s20_s25 = int_to_ptr.hbm [resolvable:$true] %s19_s25 }
   0x4   :  { %s32_s22 = sshll.u32 %s374_s21, 4  ;;  %s375_s26 = smov [#allocation2]   ;;  %s33_s22 = int_to_ptr.vmem [resolvable:$true] %s32_s22 }
   0x5   :  { %35 = dma.hbm_to_vmem [thread:$0]  %s31_s20, 128, %s33_s22, [#allocation6]  }
   0x6   :  { %s21_s27 = sshll.u32 %s375_s26, 4  ;;  %s40_s30 = sshll.u32 %s433_s2, 4  ;;  %s22_s27 = int_to_ptr.vmem [resolvable:$true] %s21_s27  ;;  %s41_s30 = int_to_ptr.hbm [resolvable:$true] %s40_s30 }
   0x7   :  { %24 = dma.hbm_to_vmem [thread:$0]  %s20_s25, 128, %s22_s27, [#allocation3]  }
   0x8   :  { %s376_s1 = smov [#allocation7]   ;;  %s53_s9 = sshll.u32 %s434_s3, 4  ;;  %s54_s9 = int_to_ptr.hbm [resolvable:$true] %s53_s9 }
   0x9   :  { %s42_s6 = sshll.u32 %s376_s1, 4  ;;  %s377_s10 = smov 256   ;;  %s43_s6 = int_to_ptr.vmem [resolvable:$true] %s42_s6 }
   0xa   :  { %s378_s0 = smov 16   ;;  %s379_s11 = smov [#allocation8]  }
   0xb   :  { %48 = dma.hbm_to_vmem [thread:$0]  %s41_s30, 1024, %s43_s6, [#allocation6], %s377_s10, %s377_s10, %s378_s0  }
   0xc   :  { %s55_s12 = sshll.u32 %s379_s11, 4  ;;  %s56_s12 = int_to_ptr.vmem [resolvable:$true] %s55_s12 }
   0xd   :  { %61 = dma.hbm_to_vmem [thread:$0]  %s54_s9, 512, %s56_s12, [#allocation9], %s377_s10, %s377_s10, %s378_s0  }
   0xe   :  { %366 = dma.done.wait [#allocation3], 128  }
   0xf   :  { %367 = vsyncadd [#allocation3], 4294967168 }
  0x10   :  { %368 = dma.done.wait [#allocation6], 1152  }
  0x11   :  { %369 = vsyncadd [#allocation6], 4294966144 }
  0x12   :  { %370 = dma.done.wait [#allocation9], 512  }
  0x13   :  { %371 = vsyncadd [#allocation9], 4294966784  ;;  %v88_v0 = vld [vmem:[#allocation7 + $0x38] sm:$0xff]  ;;  %v86_v1 = vld [vmem:[#allocation7 + $0x28] sm:$0xff]  ;;  %vm94_vm0 = vcmask 130048   ;;  %vm138_vm1 = vcmask 261120  }
  0x14   :  { %174 = vmatpush.msra.mxu3 %v88_v0  ;;  %v84_v2 = vld [vmem:[#allocation7 + $0x18] sm:$0xff]  ;;  %v91_v4 = vld [vmem:[#allocation8 + $0x8] sm:$0xff]  ;;  %v87_v6 = vld [vmem:[#allocation7 + $0x30] sm:$0xff]  ;;  %s218_s16 = sshll.u32 %s436_s5, 4  ;;  %s219_s16 = int_to_ptr.hbm [resolvable:$true] %s218_s16 }
  0x15   :  { %v93_v3 = vld [vmem:[#allocation8 + $0x18] sm:$0xff]  ;;  %154 = vmatpush.msra.mxu2 %v87_v6  ;;  %v85_v7 = vld [vmem:[#allocation7 + $0x20] sm:$0xff]  ;;  %v82_v8 = vld [vmem:[#allocation7 + $0x8] sm:$0xff] }
  0x16   :  { %132 = vmatpush.msra.mxu1 %v93_v3  ;;  %v89_v5 = vld [vmem:[#allocation5] sm:$0xff]  ;;  %175 = vmatpush.msra.mxu3 %v86_v1  ;;  %v92_v9 = vld [vmem:[#allocation8 + $0x10] sm:$0xff]  ;;  %v90_v12 = vld [vmem:[#allocation8] sm:$0xff] }
  0x17   :  { %v80_v10 = vld [vmem:[#allocation2] sm:$0xff]  ;;  %155 = vmatpush.msra.mxu2 %v85_v7  ;;  %112 = vmatpush.msra.mxu0 %v92_v9  ;;  %v81_v13 = vld [vmem:[#allocation7] sm:$0xff] }
  0x18   :  { %133 = vmatpush.msra.mxu1 %v91_v4  ;;  %176 = vmatpush.msra.mxu3 %v84_v2  ;;  %v83_v11 = vld [vmem:[#allocation7 + $0x10] sm:$0xff] }
  0x19   :  { %231 = vmatmul.msk.f32.vlgmr.msra.gmra.mxu1 %vm94_vm0, %v89_v5  ;;  %156 = vmatpush.msra.mxu2 %v83_v11  ;;  %v182_v14 = vld [vmem:[%s435_s4] sm:$0x3]  ;;  %s380_s4 = smov [#allocation10]  }
  0x1a   :  { %177 = vmatpush.msra.mxu3 %v82_v8  ;;  %113 = vmatpush.msra.mxu0 %v90_v12  ;;  %v185_v16 = vperm.slane %v182_v14, 1  ;;  %v184_v28 = vperm.slane %v182_v14, 0  ;;  %s216_s13 = sshll.u32 %s380_s4, 4  ;;  %s217_s13 = int_to_ptr.vmem [resolvable:$true] %s216_s13 }
  0x1b   :  { %233 = vmatmul.msk.f32.vlgmr.msra.gmra.mxu3 %vm138_vm1, %v80_v10  ;;  %157 = vmatpush.msra.mxu2 %v81_v13 }
  0x1c   :  { %230 = vmatmul.msk.f32.vlgmr.msra.gmra.mxu0 %vm94_vm0, %v89_v5  ;;  %232 = vmatmul.msk.f32.vlgmr.msra.gmra.mxu2 %vm138_vm1, %v80_v10 }
  0x96   :  { %v135_v15 = vpop.f32.mrf.mxu1 }
  0x99   :  { %v115_v24 = vpop.f32.mrf.mxu0 }
  0x9e   :  { %v179_v17 = vpop.f32.mrf.mxu3 }
  0x9f   :  { %v180_v18 = vadd.f32 %v179_v17, %v135_v15  ;;  %v159_v25 = vpop.f32.mrf.mxu2 }
  0xa0   :  { %v160_v27 = vadd.f32 %v159_v25, %v115_v24 }
  0xa1   :  { %v189_v19 = vadd.f32 %v185_v16, %v180_v18 }
  0xa2   :  { %v188_v33 = vadd.f32 %v184_v28, %v160_v27 }
  0xa3   :  { %v234_v20 = vmul.f32 -1.442695, %v189_v19 }
  0xa5   :  { %242 = vpow2.f32 %v234_v20 }
  0xab   :  { %v243_v21 = vpop.eup %242 }
  0xac   :  { %v193_v22 = vadd.f32 1.0, %v243_v21 }
  0xae   :  { %244 = vrcp.f32 %v193_v22  ;;  %v205_v30 = vand.u32 2147483648, %v193_v22  ;;  %v203_v32 = vand.u32 2147483647, %v193_v22  ;;  %vm199_vm3 = vweird.f32 %v193_v22 }
  0xb0   :  { %v206_v35 = vor.u32 1.1754944e-38, %v205_v30  ;;  %vm204_vm5 = vcmp.eq.f32.partialorder %v203_v32, 8.507059e+37 }
  0xb4   :  { %v245_v23 = vpop.eup %244 }
  0xb5   :  { %v195_v26 = vmul.f32 %v245_v23, %v193_v22  ;;  %vm200_vm2 = vweird.f32 %v245_v23 }
  0xb6   :  { %vm201_vm4 = vmor %vm199_vm3, %vm200_vm2 }
  0xb7   :  { %v196_v29 = vsub.f32 1.0, %v195_v26 }
  0xb9   :  { %v197_v31 = vmul.f32 %v245_v23, %v196_v29 }
  0xbb   :  { %v198_v34 = vadd.f32 %v245_v23, %v197_v31 }
  0xbd   :  { %v202_v36 = vsel %vm201_vm4, %v245_v23, %v198_v34 }
  0xbe   :  { %v207_v37 = vsel %vm204_vm5, %v206_v35, %v202_v36 }
  0xbf   :  { %v209_v38 = vmul.f32 %v207_v37, %v188_v33 }
  0xc1   :  { %210 = vst [vmem:[#allocation10] sm:$0xff] %v209_v38 }
  0xc2   :  { %221 = dma.vmem_to_hbm [thread:$0]  %s217_s13, 128, %s219_s16, [#allocation4]  }
  0xc3   :  { %372 = dma.done.wait [#allocation4], 128  }
  0xc4   :  { %373 = vsyncadd [#allocation4], 4294967168 }
  0xc5   :  { %226 = vsyncpa [#allocation3], 1 }
  0xc6   :  { %227 = vsyncpa [#allocation6], 1 }
  0xc7   :  { %228 = vsyncpa [#allocation9], 1 }
  0xc8   :  { %229 = vsyncpa [#allocation4], 1 }

</bundles_post_ra>
